<compile_context>
chip_gen: v7x
topology: tpu7x:2x2x1
jax: 0.10.0
libtpu: 0.0.40
codegen_flags: <defaults>
</compile_context>

<pallas_src>
import functools
import math

import jax
import jax.numpy as jnp
from jax.experimental import pallas as pl
from jax.experimental.pallas import tpu as pltpu


def _gelu(x):
    # tanh-approx GELU (same formula used in kernel and reference).
    c = 0.7978845608028654  # sqrt(2/pi)
    return 0.5 * x * (1.0 + jnp.tanh(c * (x + 0.044715 * (x * x * x))))


def _fourier_mlp_kernel(xc_ref,
                        coeff_ref, phase_ref,
                        w_in_ref, w_t1_ref, b_t1_ref,
                        w_t2_ref, b_emb_ref,
                        w_h_ref, b_h_ref,
                        w_out_ref, b_out_ref,
                        o_ref, *, in_dim):
    f32 = jnp.float32
    bf16 = jnp.bfloat16

    xc = xc_ref[...].astype(f32)               # (bb, in_dim + 1): [inputs | cond]
    x = xc[:, :in_dim]                         # (bb, in_dim)
    cond = xc[:, in_dim:in_dim + 1]            # (bb, 1)

    # Fourier timestep features (f32 VPU/EUP math; stay in vregs).
    ang = cond * coeff_ref[...] + phase_ref[...]                       # (bb, C)
    fourier = jnp.concatenate([jnp.sin(ang), jnp.cos(ang)], axis=-1)   # (bb, 2C)

    # timestep_embed: one K=2C bf16 matmul (fills the 256-deep MXU), GELU, K=C matmul.
    t = (jnp.dot(fourier.astype(bf16), w_t1_ref[...],
                 preferred_element_type=f32) + b_t1_ref[...])
    t = _gelu(t)
    embed_cond = jnp.dot(t.astype(bf16), w_t2_ref[...],
                         preferred_element_type=f32)

    # input_embed: tiny K -> VPU broadcast FMAs (no MXU weight load);
    # large K -> regular bf16 MXU matmul.  b_emb = b_in + b_t2 (pre-summed).
    if in_dim <= 16:
        w_in = w_in_ref[...].astype(f32)            # (in_dim, C)
        embed_ins = b_emb_ref[...]                  # (1, C) -> broadcasts up
        for d in range(in_dim):
            embed_ins = embed_ins + x[:, d:d + 1] * w_in[d:d + 1, :]
    else:
        embed_ins = (jnp.dot(x.astype(bf16), w_in_ref[...],
                             preferred_element_type=f32) + b_emb_ref[...])

    # Trunk: GELU, num_layers x (Linear + GELU), output head.
    h = _gelu(embed_ins + embed_cond)
    for l in range(w_h_ref.shape[0]):               # static unroll over layers
        h = (jnp.dot(h.astype(bf16), w_h_ref[l],
                     preferred_element_type=f32) + b_h_ref[l])
        h = _gelu(h)

    out = (jnp.dot(h.astype(bf16), w_out_ref[...],
                   preferred_element_type=f32) + b_out_ref[...])
    o_ref[...] = out.astype(o_ref.dtype)


def _pick_block_b(B, requested):
    if requested is not None:
        assert B % requested == 0, "block_b must divide the batch"
        assert requested % 8 == 0 or requested == B, "block_b must be a multiple of 8"
        return requested
    if B % 8 != 0:
        return B                      # single tile; sublane dim equals full array dim
    # When B >= 16, force >= 2 grid steps so ("parallel",) can shard across
    # v7x's 2 TensorCores (extra grid step costs ~0.35us on 1-TC chips: negligible).
    want_multi = B >= 16
    for cand in (2048, 1024, 512, 256, 128, 64, 32, 16, 8):
        if B % cand == 0 and (not want_multi or cand <= B // 2):
            return cand
    return B


def fourier_mlp_forward(cond, inputs, params, *, block_b=None):
    """Fused FourierMLP forward: cond (B,)|(B,1)|() ; inputs (B, in_dim...)."""
    B = inputs.shape[0]
    x = inputs.reshape(B, -1)
    in_dim = x.shape[1]
    dtype = x.dtype
    f32 = jnp.float32

    C = params["coeff"].shape[1]
    out_dim = params["w_out"].shape[1]
    L = params["w_h"].shape[0]
    assert L >= 1

    # Merge cond into the input tile: one (bb, in_dim+1) DMA per grid step.
    cond2d = jnp.broadcast_to(jnp.reshape(cond, (-1, 1)).astype(dtype), (B, 1))
    xc = jnp.concatenate([x, cond2d], axis=-1)            # (B, in_dim + 1)

    # Pre-sum the two biases that are added before the first trunk GELU.
    b_emb = (params["b_in"].astype(f32) + params["b_t2"].astype(f32))

    bb = _pick_block_b(B, block_b)
    grid = (B // bb,)

    # Advisory cost hint for XLA scheduling around the custom call.
    flops = 2 * B * (2 * C * C + C * C + in_dim * C + L * C * C + C * out_dim)
    transcendentals = B * (2 * C + (2 + L) * C)
    param_bytes = sum(int(p.size) * int(p.dtype.itemsize) for p in params.values())
    bytes_accessed = B * (in_dim + 1 + out_dim) * int(dtype.itemsize) + param_bytes

    tile_map = lambda i: (i, 0)
    rep2 = lambda i: (0, 0)
    rep3 = lambda i: (0, 0, 0)

    in_specs = [
        pl.BlockSpec((bb, in_dim + 1), tile_map),  # [inputs | cond] tile
        pl.BlockSpec((1, C), rep2),                # timestep_coeff   (VMEM-resident)
        pl.BlockSpec((1, C), rep2),                # timestep_phase
        pl.BlockSpec((in_dim, C), rep2),           # input_embed W         (bf16)
        pl.BlockSpec((2 * C, C), rep2),            # timestep_embed[0] W   (bf16)
        pl.BlockSpec((1, C), rep2),                # timestep_embed[0] b
        pl.BlockSpec((C, C), rep2),                # timestep_embed[2] W   (bf16)
        pl.BlockSpec((1, C), rep2),                # b_in + b_t2 (pre-summed)
        pl.BlockSpec((L, C, C), rep3),             # hidden Ws (stacked)   (bf16)
        pl.BlockSpec((L, 1, C), rep3),             # hidden bs (stacked)
        pl.BlockSpec((C, out_dim), rep2),          # output W              (bf16)
        pl.BlockSpec((1, out_dim), rep2),          # output b
    ]

    kernel = functools.partial(_fourier_mlp_kernel, in_dim=in_dim)

    out = pl.pallas_call(
        kernel,
        out_shape=jax.ShapeDtypeStruct((B, out_dim), dtype),
        grid_spec=pltpu.PrefetchScalarGridSpec(
            num_scalar_prefetch=0,
            grid=grid,
            in_specs=in_specs,
            out_specs=pl.BlockSpec((bb, out_dim), tile_map),
        ),
        compiler_params=pltpu.CompilerParams(
            dimension_semantics=("parallel",),
            vmem_limit_bytes=32 * 1024 * 1024,
        ),
        cost_estimate=pl.CostEstimate(
            flops=flops,
            transcendentals=transcendentals,
            bytes_accessed=bytes_accessed,
        ),
    )(xc,
      params["coeff"], params["phase"],
      params["w_in"], params["w_t1"], params["b_t1"],
      params["w_t2"], b_emb,
      params["w_h"], params["b_h"],
      params["w_out"], params["b_out"])

    return out.reshape(B, out_dim)


def init_fourier_mlp_params(key, in_dim=2, out_dim=2, num_layers=2, channels=128,
                            zero_init=True):
    """Matches nn.Linear default init U(-1/sqrt(fan_in), 1/sqrt(fan_in)).
    Matmul weights are stored transposed (in, out) and in bf16 (MXU-native);
    biases / Fourier coeff+phase stay f32 (VPU math)."""
    f32 = jnp.float32
    bf16 = jnp.bfloat16
    keys = iter(jax.random.split(key, 9 + 2 * num_layers))

    def linear(kw, kb, fan_in, fan_out):
        bound = 1.0 / math.sqrt(fan_in)
        w = jax.random.uniform(kw, (fan_in, fan_out), dtype=f32,
                               minval=-bound, maxval=bound).astype(bf16)
        b = jax.random.uniform(kb, (1, fan_out), dtype=f32,
                               minval=-bound, maxval=bound)
        return w, b

    coeff = jnp.linspace(0.1, 100.0, channels, dtype=f32).reshape(1, channels)
    phase = jax.random.normal(next(keys), (1, channels), dtype=f32)

    w_in, b_in = linear(next(keys), next(keys), in_dim, channels)
    w_t1, b_t1 = linear(next(keys), next(keys), 2 * channels, channels)
    w_t2, b_t2 = linear(next(keys), next(keys), channels, channels)

    w_h_list, b_h_list = [], []
    for _ in range(num_layers):
        w, b = linear(next(keys), next(keys), channels, channels)
        w_h_list.append(w)
        b_h_list.append(b)

    if zero_init:
        w_out = jnp.zeros((channels, out_dim), dtype=bf16)
        b_out = jnp.zeros((1, out_dim), dtype=f32)
    else:
        w_out, b_out = linear(next(keys), next(keys), channels, out_dim)

    return {
        "coeff": coeff, "phase": phase,
        "w_in": w_in, "b_in": b_in,
        "w_t1": w_t1, "b_t1": b_t1,
        "w_t2": w_t2, "b_t2": b_t2,
        "w_h": jnp.stack(w_h_list), "b_h": jnp.stack(b_h_list),
        "w_out": w_out, "b_out": b_out,
    }


def fourier_mlp_reference(cond, inputs, params):
    """Pure-JAX f32 reference (same math / same GELU approximation / same bf16
    weight values, but f32 activations and HIGHEST-precision dots)."""
    hp = jax.lax.Precision.HIGHEST
    f32 = jnp.float32
    B = inputs.shape[0]
    x = inputs.reshape(B, -1).astype(f32)
    cond2d = jnp.broadcast_to(jnp.reshape(cond, (-1, 1)), (B, 1)).astype(f32)

    ang = cond2d * params["coeff"] + params["phase"]
    fourier = jnp.concatenate([jnp.sin(ang), jnp.cos(ang)], axis=-1)

    t = _gelu(jnp.dot(fourier, params["w_t1"].astype(f32), precision=hp)
              + params["b_t1"])
    embed_cond = jnp.dot(t, params["w_t2"].astype(f32), precision=hp) + params["b_t2"]
    embed_ins = jnp.dot(x, params["w_in"].astype(f32), precision=hp) + params["b_in"]

    h = _gelu(embed_ins + embed_cond)
    for l in range(params["w_h"].shape[0]):
        h = _gelu(jnp.dot(h, params["w_h"][l].astype(f32), precision=hp)
                  + params["b_h"][l])
    return jnp.dot(h, params["w_out"].astype(f32), precision=hp) + params["b_out"]


if __name__ == "__main__":
    key = jax.random.PRNGKey(0)
    k_p, k_x, k_c = jax.random.split(key, 3)

    # Small shapes consistent with the module defaults:
    # batch=8, in_shape=2, out_shape=2, channels=128, num_layers=2.
    B, in_dim, out_dim, C, L = 8, 2, 2, 128, 2

    inputs = jax.random.normal(k_x, (B, in_dim), dtype=jnp.float32)
    cond = jax.random.uniform(k_c, (B,), dtype=jnp.float32)

    # Non-zero head so the end-to-end numerics are actually exercised.
    params = init_fourier_mlp_params(k_p, in_dim, out_dim, L, C, zero_init=False)
    out = jax.block_until_ready(fourier_mlp_forward(cond, inputs, params))
    ref = fourier_mlp_reference(cond, inputs, params)
    assert out.shape == (B, out_dim)
    assert jnp.allclose(out, ref, atol=3e-2, rtol=3e-2), \
        float(jnp.max(jnp.abs(out - ref)))

    # Multi-tile path (>= 2 grid steps, exercises batch tiling / parallel axis).
    B2 = 32
    inputs2 = jax.random.normal(k_x, (B2, in_dim), dtype=jnp.float32)
    cond2 = jax.random.uniform(k_c, (B2,), dtype=jnp.float32)
    out2 = jax.block_until_ready(fourier_mlp_forward(cond2, inputs2, params))
    ref2 = fourier_mlp_reference(cond2, inputs2, params)
    assert out2.shape == (B2, out_dim)
    assert jnp.allclose(out2, ref2, atol=3e-2, rtol=3e-2), \
        float(jnp.max(jnp.abs(out2 - ref2)))

    # Module default (zero_init=True) must give an all-zero output.
    params0 = init_fourier_mlp_params(k_p, in_dim, out_dim, L, C, zero_init=True)
    out0 = jax.block_until_ready(fourier_mlp_forward(cond, inputs, params0))
    assert jnp.allclose(out0, jnp.zeros_like(out0))

    print("KERNEL_OK")
</pallas_src>

<mosaic_0001>
module attributes {stable_mosaic.version = 11 : i64} {
  func.func @_fourier_mlp_kernel(%arg0: i32, %arg1: memref<8x3xf32, #tpu.memory_space<vmem>>, %arg2: memref<1x128xf32, #tpu.memory_space<vmem>>, %arg3: memref<1x128xf32, #tpu.memory_space<vmem>>, %arg4: memref<2x128xbf16, #tpu.memory_space<vmem>>, %arg5: memref<256x128xbf16, #tpu.memory_space<vmem>>, %arg6: memref<1x128xf32, #tpu.memory_space<vmem>>, %arg7: memref<128x128xbf16, #tpu.memory_space<vmem>>, %arg8: memref<1x128xf32, #tpu.memory_space<vmem>>, %arg9: memref<2x128x128xbf16, #tpu.memory_space<vmem>>, %arg10: memref<2x1x128xf32, #tpu.memory_space<vmem>>, %arg11: memref<128x2xbf16, #tpu.memory_space<vmem>>, %arg12: memref<1x2xf32, #tpu.memory_space<vmem>>, %arg13: memref<8x2xf32, #tpu.memory_space<vmem>>) attributes {dimension_semantics = [#tpu.dimension_semantics<parallel>], iteration_bounds = array<i64: 1>, scalar_prefetch = 0 : i64, scratch_operands = 0 : i64, tpu.core_type = #tpu.core_type<tc>, window_params = [{transform_indices = @transform_0, window_bounds = array<i64: 8, 3>}, {pipeline_mode = #tpu.pipeline_mode<synchronous>, transform_indices = @transform_1, window_bounds = array<i64: 1, 128>}, {pipeline_mode = #tpu.pipeline_mode<synchronous>, transform_indices = @transform_2, window_bounds = array<i64: 1, 128>}, {pipeline_mode = #tpu.pipeline_mode<synchronous>, transform_indices = @transform_3, window_bounds = array<i64: 2, 128>}, {pipeline_mode = #tpu.pipeline_mode<synchronous>, transform_indices = @transform_4, window_bounds = array<i64: 256, 128>}, {pipeline_mode = #tpu.pipeline_mode<synchronous>, transform_indices = @transform_5, window_bounds = array<i64: 1, 128>}, {pipeline_mode = #tpu.pipeline_mode<synchronous>, transform_indices = @transform_6, window_bounds = array<i64: 128, 128>}, {pipeline_mode = #tpu.pipeline_mode<synchronous>, transform_indices = @transform_7, window_bounds = array<i64: 1, 128>}, {pipeline_mode = #tpu.pipeline_mode<synchronous>, transform_indices = @transform_8, window_bounds = array<i64: 2, 128, 128>}, {pipeline_mode = #tpu.pipeline_mode<synchronous>, transform_indices = @transform_9, window_bounds = array<i64: 2, 1, 128>}, {pipeline_mode = #tpu.pipeline_mode<synchronous>, transform_indices = @transform_10, window_bounds = array<i64: 128, 2>}, {pipeline_mode = #tpu.pipeline_mode<synchronous>, transform_indices = @transform_11, window_bounds = array<i64: 1, 2>}, {transform_indices = @transform_12, window_bounds = array<i64: 8, 2>}]} {
    %c0 = arith.constant 0 : index
    %c0_0 = arith.constant 0 : index
    %0 = vector.load %arg1[%c0, %c0_0] : memref<8x3xf32, #tpu.memory_space<vmem>>, vector<8x3xf32>
    %1 = vector.extract_strided_slice %0 {offsets = [0, 0], sizes = [8, 2], strides = [1, 1]} : vector<8x3xf32> to vector<8x2xf32>
    %2 = vector.extract_strided_slice %0 {offsets = [0, 2], sizes = [8, 1], strides = [1, 1]} : vector<8x3xf32> to vector<8x1xf32>
    %c0_1 = arith.constant 0 : index
    %c0_2 = arith.constant 0 : index
    %3 = vector.load %arg2[%c0_1, %c0_2] : memref<1x128xf32, #tpu.memory_space<vmem>>, vector<1x128xf32>
    %4 = vector.broadcast %2 : vector<8x1xf32> to vector<8x128xf32>
    %5 = vector.broadcast %3 : vector<1x128xf32> to vector<8x128xf32>
    %6 = arith.mulf %4, %5 : vector<8x128xf32>
    %c0_3 = arith.constant 0 : index
    %c0_4 = arith.constant 0 : index
    %7 = vector.load %arg3[%c0_3, %c0_4] : memref<1x128xf32, #tpu.memory_space<vmem>>, vector<1x128xf32>
    %8 = vector.broadcast %7 : vector<1x128xf32> to vector<8x128xf32>
    %9 = arith.addf %6, %8 : vector<8x128xf32>
    %10 = math.sin %9 : vector<8x128xf32>
    %11 = math.cos %9 : vector<8x128xf32>
    %12 = tpu.concatenate %10, %11 in 1 : vector<8x128xf32>, vector<8x128xf32> -> vector<8x256xf32>
    %13 = arith.truncf %12 : vector<8x256xf32> to vector<8x256xbf16>
    %c0_5 = arith.constant 0 : index
    %c0_6 = arith.constant 0 : index
    %14 = vector.load %arg5[%c0_5, %c0_6] : memref<256x128xbf16, #tpu.memory_space<vmem>>, vector<256x128xbf16>
    %cst = arith.constant dense<0.000000e+00> : vector<8x128xf32>
    %15 = tpu.matmul %13, %14, %cst {dimension_numbers = #tpu.dot_dimension_numbers<[1], [0], [0], [1], [0, 0, 1, 1], [], []>} : vector<8x256xbf16>, vector<256x128xbf16>, vector<8x128xf32> -> vector<8x128xf32>
    %c0_7 = arith.constant 0 : index
    %c0_8 = arith.constant 0 : index
    %16 = vector.load %arg6[%c0_7, %c0_8] : memref<1x128xf32, #tpu.memory_space<vmem>>, vector<1x128xf32>
    %17 = vector.broadcast %16 : vector<1x128xf32> to vector<8x128xf32>
    %18 = arith.addf %15, %17 : vector<8x128xf32>
    %cst_9 = arith.constant 5.000000e-01 : f32
    %19 = vector.broadcast %cst_9 : f32 to vector<8x128xf32>
    %20 = arith.mulf %19, %18 : vector<8x128xf32>
    %21 = arith.mulf %18, %18 : vector<8x128xf32>
    %22 = arith.mulf %21, %18 : vector<8x128xf32>
    %cst_10 = arith.constant 4.471500e-02 : f32
    %23 = vector.broadcast %cst_10 : f32 to vector<8x128xf32>
    %24 = arith.mulf %23, %22 : vector<8x128xf32>
    %25 = arith.addf %18, %24 : vector<8x128xf32>
    %cst_11 = arith.constant 0.797884583 : f32
    %26 = vector.broadcast %cst_11 : f32 to vector<8x128xf32>
    %27 = arith.mulf %26, %25 : vector<8x128xf32>
    %28 = math.tanh %27 : vector<8x128xf32>
    %cst_12 = arith.constant 1.000000e+00 : f32
    %29 = vector.broadcast %cst_12 : f32 to vector<8x128xf32>
    %30 = arith.addf %29, %28 : vector<8x128xf32>
    %31 = arith.mulf %20, %30 : vector<8x128xf32>
    %32 = arith.truncf %31 : vector<8x128xf32> to vector<8x128xbf16>
    %c0_13 = arith.constant 0 : index
    %c0_14 = arith.constant 0 : index
    %33 = vector.load %arg7[%c0_13, %c0_14] : memref<128x128xbf16, #tpu.memory_space<vmem>>, vector<128x128xbf16>
    %cst_15 = arith.constant dense<0.000000e+00> : vector<8x128xf32>
    %34 = tpu.matmul %32, %33, %cst_15 {dimension_numbers = #tpu.dot_dimension_numbers<[1], [0], [0], [1], [0, 0, 1, 1], [], []>} : vector<8x128xbf16>, vector<128x128xbf16>, vector<8x128xf32> -> vector<8x128xf32>
    %c0_16 = arith.constant 0 : index
    %c0_17 = arith.constant 0 : index
    %35 = vector.load %arg4[%c0_16, %c0_17] : memref<2x128xbf16, #tpu.memory_space<vmem>>, vector<2x128xbf16>
    %36 = arith.extf %35 : vector<2x128xbf16> to vector<2x128xf32>
    %c0_18 = arith.constant 0 : index
    %c0_19 = arith.constant 0 : index
    %37 = vector.load %arg8[%c0_18, %c0_19] : memref<1x128xf32, #tpu.memory_space<vmem>>, vector<1x128xf32>
    %38 = vector.extract_strided_slice %1 {offsets = [0, 0], sizes = [8, 1], strides = [1, 1]} : vector<8x2xf32> to vector<8x1xf32>
    %39 = vector.extract_strided_slice %36 {offsets = [0, 0], sizes = [1, 128], strides = [1, 1]} : vector<2x128xf32> to vector<1x128xf32>
    %40 = vector.broadcast %38 : vector<8x1xf32> to vector<8x128xf32>
    %41 = vector.broadcast %39 : vector<1x128xf32> to vector<8x128xf32>
    %42 = arith.mulf %40, %41 : vector<8x128xf32>
    %43 = vector.broadcast %37 : vector<1x128xf32> to vector<8x128xf32>
    %44 = arith.addf %43, %42 : vector<8x128xf32>
    %45 = vector.extract_strided_slice %1 {offsets = [0, 1], sizes = [8, 1], strides = [1, 1]} : vector<8x2xf32> to vector<8x1xf32>
    %46 = vector.extract_strided_slice %36 {offsets = [1, 0], sizes = [1, 128], strides = [1, 1]} : vector<2x128xf32> to vector<1x128xf32>
    %47 = vector.broadcast %45 : vector<8x1xf32> to vector<8x128xf32>
    %48 = vector.broadcast %46 : vector<1x128xf32> to vector<8x128xf32>
    %49 = arith.mulf %47, %48 : vector<8x128xf32>
    %50 = arith.addf %44, %49 : vector<8x128xf32>
    %51 = arith.addf %50, %34 : vector<8x128xf32>
    %cst_20 = arith.constant 5.000000e-01 : f32
    %52 = vector.broadcast %cst_20 : f32 to vector<8x128xf32>
    %53 = arith.mulf %52, %51 : vector<8x128xf32>
    %54 = arith.mulf %51, %51 : vector<8x128xf32>
    %55 = arith.mulf %54, %51 : vector<8x128xf32>
    %cst_21 = arith.constant 4.471500e-02 : f32
    %56 = vector.broadcast %cst_21 : f32 to vector<8x128xf32>
    %57 = arith.mulf %56, %55 : vector<8x128xf32>
    %58 = arith.addf %51, %57 : vector<8x128xf32>
    %cst_22 = arith.constant 0.797884583 : f32
    %59 = vector.broadcast %cst_22 : f32 to vector<8x128xf32>
    %60 = arith.mulf %59, %58 : vector<8x128xf32>
    %61 = math.tanh %60 : vector<8x128xf32>
    %cst_23 = arith.constant 1.000000e+00 : f32
    %62 = vector.broadcast %cst_23 : f32 to vector<8x128xf32>
    %63 = arith.addf %62, %61 : vector<8x128xf32>
    %64 = arith.mulf %53, %63 : vector<8x128xf32>
    %65 = arith.truncf %64 : vector<8x128xf32> to vector<8x128xbf16>
    %c0_24 = arith.constant 0 : index
    %c0_25 = arith.constant 0 : index
    %c0_26 = arith.constant 0 : index
    %66 = vector.load %arg9[%c0_24, %c0_25, %c0_26] : memref<2x128x128xbf16, #tpu.memory_space<vmem>>, vector<1x128x128xbf16>
    %67 = vector.shape_cast %66 : vector<1x128x128xbf16> to vector<128x128xbf16>
    %cst_27 = arith.constant dense<0.000000e+00> : vector<8x128xf32>
    %68 = tpu.matmul %65, %67, %cst_27 {dimension_numbers = #tpu.dot_dimension_numbers<[1], [0], [0], [1], [0, 0, 1, 1], [], []>} : vector<8x128xbf16>, vector<128x128xbf16>, vector<8x128xf32> -> vector<8x128xf32>
    %c0_28 = arith.constant 0 : index
    %c0_29 = arith.constant 0 : index
    %c0_30 = arith.constant 0 : index
    %69 = vector.load %arg10[%c0_28, %c0_29, %c0_30] : memref<2x1x128xf32, #tpu.memory_space<vmem>>, vector<1x1x128xf32>
    %70 = vector.shape_cast %69 : vector<1x1x128xf32> to vector<1x128xf32>
    %71 = vector.broadcast %70 : vector<1x128xf32> to vector<8x128xf32>
    %72 = arith.addf %68, %71 : vector<8x128xf32>
    %cst_31 = arith.constant 5.000000e-01 : f32
    %73 = vector.broadcast %cst_31 : f32 to vector<8x128xf32>
    %74 = arith.mulf %73, %72 : vector<8x128xf32>
    %75 = arith.mulf %72, %72 : vector<8x128xf32>
    %76 = arith.mulf %75, %72 : vector<8x128xf32>
    %cst_32 = arith.constant 4.471500e-02 : f32
    %77 = vector.broadcast %cst_32 : f32 to vector<8x128xf32>
    %78 = arith.mulf %77, %76 : vector<8x128xf32>
    %79 = arith.addf %72, %78 : vector<8x128xf32>
    %cst_33 = arith.constant 0.797884583 : f32
    %80 = vector.broadcast %cst_33 : f32 to vector<8x128xf32>
    %81 = arith.mulf %80, %79 : vector<8x128xf32>
    %82 = math.tanh %81 : vector<8x128xf32>
    %cst_34 = arith.constant 1.000000e+00 : f32
    %83 = vector.broadcast %cst_34 : f32 to vector<8x128xf32>
    %84 = arith.addf %83, %82 : vector<8x128xf32>
    %85 = arith.mulf %74, %84 : vector<8x128xf32>
    %86 = arith.truncf %85 : vector<8x128xf32> to vector<8x128xbf16>
    %c1 = arith.constant 1 : index
    %c0_35 = arith.constant 0 : index
    %c0_36 = arith.constant 0 : index
    %87 = vector.load %arg9[%c1, %c0_35, %c0_36] : memref<2x128x128xbf16, #tpu.memory_space<vmem>>, vector<1x128x128xbf16>
    %88 = vector.shape_cast %87 : vector<1x128x128xbf16> to vector<128x128xbf16>
    %cst_37 = arith.constant dense<0.000000e+00> : vector<8x128xf32>
    %89 = tpu.matmul %86, %88, %cst_37 {dimension_numbers = #tpu.dot_dimension_numbers<[1], [0], [0], [1], [0, 0, 1, 1], [], []>} : vector<8x128xbf16>, vector<128x128xbf16>, vector<8x128xf32> -> vector<8x128xf32>
    %c1_38 = arith.constant 1 : index
    %c0_39 = arith.constant 0 : index
    %c0_40 = arith.constant 0 : index
    %90 = vector.load %arg10[%c1_38, %c0_39, %c0_40] : memref<2x1x128xf32, #tpu.memory_space<vmem>>, vector<1x1x128xf32>
    %91 = vector.shape_cast %90 : vector<1x1x128xf32> to vector<1x128xf32>
    %92 = vector.broadcast %91 : vector<1x128xf32> to vector<8x128xf32>
    %93 = arith.addf %89, %92 : vector<8x128xf32>
    %cst_41 = arith.constant 5.000000e-01 : f32
    %94 = vector.broadcast %cst_41 : f32 to vector<8x128xf32>
    %95 = arith.mulf %94, %93 : vector<8x128xf32>
    %96 = arith.mulf %93, %93 : vector<8x128xf32>
    %97 = arith.mulf %96, %93 : vector<8x128xf32>
    %cst_42 = arith.constant 4.471500e-02 : f32
    %98 = vector.broadcast %cst_42 : f32 to vector<8x128xf32>
    %99 = arith.mulf %98, %97 : vector<8x128xf32>
    %100 = arith.addf %93, %99 : vector<8x128xf32>
    %cst_43 = arith.constant 0.797884583 : f32
    %101 = vector.broadcast %cst_43 : f32 to vector<8x128xf32>
    %102 = arith.mulf %101, %100 : vector<8x128xf32>
    %103 = math.tanh %102 : vector<8x128xf32>
    %cst_44 = arith.constant 1.000000e+00 : f32
    %104 = vector.broadcast %cst_44 : f32 to vector<8x128xf32>
    %105 = arith.addf %104, %103 : vector<8x128xf32>
    %106 = arith.mulf %95, %105 : vector<8x128xf32>
    %107 = arith.truncf %106 : vector<8x128xf32> to vector<8x128xbf16>
    %c0_45 = arith.constant 0 : index
    %c0_46 = arith.constant 0 : index
    %108 = vector.load %arg11[%c0_45, %c0_46] : memref<128x2xbf16, #tpu.memory_space<vmem>>, vector<128x2xbf16>
    %cst_47 = arith.constant dense<0.000000e+00> : vector<8x2xf32>
    %109 = tpu.matmul %107, %108, %cst_47 {dimension_numbers = #tpu.dot_dimension_numbers<[1], [0], [0], [1], [0, 0, 1, 1], [], []>} : vector<8x128xbf16>, vector<128x2xbf16>, vector<8x2xf32> -> vector<8x2xf32>
    %c0_48 = arith.constant 0 : index
    %c0_49 = arith.constant 0 : index
    %110 = vector.load %arg12[%c0_48, %c0_49] : memref<1x2xf32, #tpu.memory_space<vmem>>, vector<1x2xf32>
    %111 = vector.broadcast %110 : vector<1x2xf32> to vector<8x2xf32>
    %112 = arith.addf %109, %111 : vector<8x2xf32>
    %c0_50 = arith.constant 0 : index
    %c0_51 = arith.constant 0 : index
    %113 = vector.load %arg13[%c0_50, %c0_51] : memref<8x2xf32, #tpu.memory_space<vmem>>, vector<8x2xf32>
    tpu.vector_store %arg13[%c0_50, %c0_51], %112 {strides = array<i32>} : memref<8x2xf32, #tpu.memory_space<vmem>>, vector<8x2xf32>,
    return
  }
  func.func @transform_0(%arg0: i32) -> (i32, i32) {
    %c0_i32 = arith.constant 0 : i32
    %c0_i32_0 = arith.constant 0 : i32
    return %arg0, %c0_i32 : i32, i32
  }
  func.func @transform_1(%arg0: i32) -> (i32, i32) {
    %c0_i32 = arith.constant 0 : i32
    %c0_i32_0 = arith.constant 0 : i32
    %c0_i32_1 = arith.constant 0 : i32
    return %c0_i32, %c0_i32_0 : i32, i32
  }
  func.func @transform_2(%arg0: i32) -> (i32, i32) {
    %c0_i32 = arith.constant 0 : i32
    %c0_i32_0 = arith.constant 0 : i32
    %c0_i32_1 = arith.constant 0 : i32
    return %c0_i32, %c0_i32_0 : i32, i32
  }
  func.func @transform_3(%arg0: i32) -> (i32, i32) {
    %c0_i32 = arith.constant 0 : i32
    %c0_i32_0 = arith.constant 0 : i32
    %c0_i32_1 = arith.constant 0 : i32
    return %c0_i32, %c0_i32_0 : i32, i32
  }
  func.func @transform_4(%arg0: i32) -> (i32, i32) {
    %c0_i32 = arith.constant 0 : i32
    %c0_i32_0 = arith.constant 0 : i32
    %c0_i32_1 = arith.constant 0 : i32
    return %c0_i32, %c0_i32_0 : i32, i32
  }
  func.func @transform_5(%arg0: i32) -> (i32, i32) {
    %c0_i32 = arith.constant 0 : i32
    %c0_i32_0 = arith.constant 0 : i32
    %c0_i32_1 = arith.constant 0 : i32
    return %c0_i32, %c0_i32_0 : i32, i32
  }
  func.func @transform_6(%arg0: i32) -> (i32, i32) {
    %c0_i32 = arith.constant 0 : i32
    %c0_i32_0 = arith.constant 0 : i32
    %c0_i32_1 = arith.constant 0 : i32
    return %c0_i32, %c0_i32_0 : i32, i32
  }
  func.func @transform_7(%arg0: i32) -> (i32, i32) {
    %c0_i32 = arith.constant 0 : i32
    %c0_i32_0 = arith.constant 0 : i32
    %c0_i32_1 = arith.constant 0 : i32
    return %c0_i32, %c0_i32_0 : i32, i32
  }
  func.func @transform_8(%arg0: i32) -> (i32, i32, i32) {
    %c0_i32 = arith.constant 0 : i32
    %c0_i32_0 = arith.constant 0 : i32
    %c0_i32_1 = arith.constant 0 : i32
    %c0_i32_2 = arith.constant 0 : i32
    return %c0_i32, %c0_i32_0, %c0_i32_1 : i32, i32, i32
  }
  func.func @transform_9(%arg0: i32) -> (i32, i32, i32) {
    %c0_i32 = arith.constant 0 : i32
    %c0_i32_0 = arith.constant 0 : i32
    %c0_i32_1 = arith.constant 0 : i32
    %c0_i32_2 = arith.constant 0 : i32
    return %c0_i32, %c0_i32_0, %c0_i32_1 : i32, i32, i32
  }
  func.func @transform_10(%arg0: i32) -> (i32, i32) {
    %c0_i32 = arith.constant 0 : i32
    %c0_i32_0 = arith.constant 0 : i32
    %c0_i32_1 = arith.constant 0 : i32
    return %c0_i32, %c0_i32_0 : i32, i32
  }
  func.func @transform_11(%arg0: i32) -> (i32, i32) {
    %c0_i32 = arith.constant 0 : i32
    %c0_i32_0 = arith.constant 0 : i32
    %c0_i32_1 = arith.constant 0 : i32
    return %c0_i32, %c0_i32_0 : i32, i32
  }
  func.func @transform_12(%arg0: i32) -> (i32, i32) {
    %c0_i32 = arith.constant 0 : i32
    %c0_i32_0 = arith.constant 0 : i32
    return %arg0, %c0_i32 : i32, i32
  }
}

</mosaic_0001>

<bundles_post_ra>
// kernel: tpu_custom_call.1
= control target key start
LH: loop header
LB: loop body
LE: loop exit
PB: predicated region body
PF: predicated region fallthrough
CT: control target
= control target key end

     0   :  { %17 = vsyncpa [#allocation3], 0  ;;  %s1574_s0 = inlined_call_operand.vmem [shape: f32[8,3], index: 0, kind: input, shape index: {}]   ;;  %s1575_s1 = inlined_call_operand.vmem [shape: f32[1,128], index: 1, kind: input, shape index: {}]   ;;  %s1576_s2 = inlined_call_operand.vmem [shape: f32[1,128], index: 2, kind: input, shape index: {}]   ;;  %s1577_s3 = inlined_call_operand.vmem [shape: bf16[2,128], index: 3, kind: input, shape index: {}]   ;;  %s1578_s4 = inlined_call_operand.hbm [shape: bf16[256,128], index: 4, kind: input, shape index: {}]   ;;  %s1579_s5 = inlined_call_operand.vmem [shape: f32[1,128], index: 5, kind: input, shape index: {}]   ;;  %s1580_s6 = inlined_call_operand.vmem [shape: bf16[128,128], index: 6, kind: input, shape index: {}]   ;;  %s1581_s7 = inlined_call_operand.vmem [shape: f32[1,128], index: 7, kind: input, shape index: {}]   ;;  %s1582_s8 = inlined_call_operand.hbm [shape: bf16[2,128,128], index: 8, kind: input, shape index: {}]   ;;  %s1583_s9 = inlined_call_operand.vmem [shape: f32[2,1,128], index: 9, kind: input, shape index: {}]   ;;  %s1584_s10 = inlined_call_operand.vmem [shape: bf16[128,2], index: 10, kind: input, shape index: {}]   ;;  %s1585_s11 = inlined_call_operand.vmem [shape: f32[1,2], index: 11, kind: input, shape index: {}]   ;;  %s1586_s12 = inlined_call_operand.vmem [shape: f32[8,2], index: 12, kind: output, shape index: {}]  }
   0x1   :  { %18 = vsyncpa [#allocation5], 0  ;;  %s1326_s21 = smov [#allocation2]   ;;  %s1278_s25 = scalar_lea.hbm %s1578_s4, 2048 }
   0x2   :  { %s32_s22 = sshll.u32 %s1326_s21, 4  ;;  %p1279_p0 = scmp.ne.s32.totalorder %s1578_s4, %s1278_s25  ;;  %s33_s22 = int_to_ptr.vmem [resolvable:$true] %s32_s22 }
   0x3   :  { %p1282_p1 = scmp.lt.u32.totalorder %s1278_s25, %s1578_s4 }
   0x5   :  { %p1284_p2 = pnand %p1282_p1, %p1279_p0 }
   0x7   :  { %1287 = shalt.err (!%p1284_p2)
}
   0x8   :  { %s1288_s30 = scalar_lea.vmem %s33_s22, 2048  ;;  %p1293_p4 = scmp.lt.s32.totalorder %s33_s22, %s33_s22 }
   0x9   :  { %p1289_p3 = scmp.ne.s32.totalorder %s33_s22, %s1288_s30  ;;  %p1294_p5 = scmp.lt.s32.totalorder %s1288_s30, %s1288_s30 }
   0xb   :  { %p1295_p6 = por %p1294_p5, %p1293_p4 }
   0xd   :  { %p1296_p7 = pnand %p1295_p6, %p1289_p3 }
   0xf   :  { %1299 = shalt.err (!%p1296_p7)
}
  0x10   :  { %s1327_s13 = smov 64   ;;  %s1328_s14 = smov 4  }
  0x11   :  { %38 = dma.hbm_to_vmem [thread:$0]  %s1578_s4, 2048, %s33_s22, [#allocation3], %s1327_s13, %s1327_s13, %s1328_s14  }
  0x12   :  { %s1329_s17 = smov [#allocation4]   ;;  %s1300_s21 = scalar_lea.hbm %s1582_s8, 2048 }
  0x13   :  { %s50_s18 = sshll.u32 %s1329_s17, 4  ;;  %p1301_p8 = scmp.ne.s32.totalorder %s1582_s8, %s1300_s21  ;;  %s51_s18 = int_to_ptr.vmem [resolvable:$true] %s50_s18 }
  0x14   :  { %p1304_p9 = scmp.lt.u32.totalorder %s1300_s21, %s1582_s8 }
  0x16   :  { %p1306_p10 = pnand %p1304_p9, %p1301_p8 }
  0x18   :  { %1309 = shalt.err (!%p1306_p10)
}
  0x19   :  { %s1310_s27 = scalar_lea.vmem %s51_s18, 2048  ;;  %p1315_p12 = scmp.lt.s32.totalorder %s51_s18, %s51_s18 }
  0x1a   :  { %p1311_p11 = scmp.ne.s32.totalorder %s51_s18, %s1310_s27  ;;  %p1316_p13 = scmp.lt.s32.totalorder %s1310_s27, %s1310_s27 }
  0x1c   :  { %p1317_p0 = por %p1316_p13, %p1315_p12 }
  0x1e   :  { %p1318_p1 = pnand %p1317_p0, %p1311_p11 }
  0x20   :  { %1321 = shalt.err (!%p1318_p1)
}
  0x21   :  { %56 = dma.hbm_to_vmem [thread:$0]  %s1582_s8, 2048, %s51_s18, [#allocation5], %s1327_s13, %s1327_s13, %s1328_s14  }
  0x22   :  { %1322 = dma.done.wait [#allocation3], 2048  }
  0x23   :  { %1323 = vsyncadd [#allocation3], 4294965248 }
  0x24   :  { %1324 = dma.done.wait [#allocation5], 2048  }
  0x25   :  { %1325 = vsyncadd [#allocation5], 4294965248  ;;  %v1330_v0 = vmov 2   ;;  %v1433_v1 = vld [vmem:[%s1574_s0] sm:$0xff]  ;;  %v1220_v4 = vld [vmem:[#allocation2 + $0x48] sm:$0xff]  }
  0x26   :  { %1214 = vset.pattern.permute.xlu0 %v1330_v0  ;;  %v1218_v2 = vld [vmem:[#allocation2 + $0x40] sm:$0xff]   ;;  %v1221_v5 = vld [vmem:[#allocation2 + $0x8] sm:$0xff]   ;;  %v1222_v6 = vld [vmem:[#allocation2 + $0x50] sm:$0xff]   ;;  %v1331_v33 = vmov 683565275  }
  0x27   :  { %74 = vperm.xlu0 %1214, %v1433_v1   ;;  %v1219_v3 = vld [vmem:[#allocation2] sm:$0xff]   ;;  %1057 = vmatprep.subr.bf16.mxu0 %v1218_v2  ;;  %v1223_v7 = vld [vmem:[#allocation2 + $0x10] sm:$0xff]   ;;  %v1224_v8 = vld [vmem:[#allocation2 + $0x58] sm:$0xff]   ;;  %v1332_v35 = vmov 2475754826  }
  0x28   :  { %1058 = vmatpush3.bf16.msra.mxu0 %v1219_v3  ;;  %v1225_v9 = vld [vmem:[#allocation2 + $0x18] sm:$0xff]   ;;  %v1226_v10 = vld [vmem:[#allocation2 + $0x60] sm:$0xff]   ;;  %v1228_v12 = vld [vmem:[#allocation2 + $0x68] sm:$0xff]   ;;  %v1333_v38 = vmov 2131351028  }
  0x29   :  { %1059 = vmatprep.subr.bf16.mxu0 %v1220_v4  ;;  %v1227_v11 = vld [vmem:[#allocation2 + $0x20] sm:$0xff]   ;;  %v1229_v13 = vld [vmem:[#allocation2 + $0x28] sm:$0xff]   ;;  %v1230_v14 = vld [vmem:[#allocation2 + $0x70] sm:$0xff]   ;;  %v1334_v41 = vmov 2102212464  }
  0x2a   :  { %v1231_v15 = vld [vmem:[#allocation2 + $0x30] sm:$0xff]   ;;  %v1232_v16 = vld [vmem:[#allocation2 + $0x78] sm:$0xff]   ;;  %v993_v18 = vld [vmem:[%s1575_s1] ss:$0 sm:$0xff]  ;;  %v1335_v44 = vmov 920167782  }
  0x2b   :  { %v1233_v17 = vld [vmem:[#allocation2 + $0x38] sm:$0xff]   ;;  %v994_v19 = vld [vmem:[%s1576_s2] ss:$0 sm:$0xff]  ;;  %v1336_v47 = vmov 1326507024  }
  0x2c   :  { %1060 = vmatpush3.bf16.msra.mxu0 %v1221_v5 }
  0x2d   :  { %1061 = vmatprep.subr.bf16.mxu0 %v1222_v6 }
  0x30   :  { %1062 = vmatpush3.bf16.msra.mxu0 %v1223_v7 }
  0x31   :  { %1063 = vmatprep.subr.bf16.mxu0 %v1224_v8 }
  0x34   :  { %1064 = vmatpush3.bf16.msra.mxu0 %v1225_v9 }
  0x35   :  { %1065 = vmatprep.subr.bf16.mxu0 %v1226_v10 }
  0x38   :  { %1066 = vmatpush3.bf16.msra.mxu0 %v1227_v11 }
  0x39   :  { %1067 = vmatprep.subr.bf16.mxu0 %v1228_v12 }
  0x3c   :  { %1068 = vmatpush3.bf16.msra.mxu0 %v1229_v13 }
  0x3d   :  { %1069 = vmatprep.subr.bf16.mxu0 %v1230_v14 }
  0x40   :  { %1070 = vmatpush3.bf16.msra.mxu0 %v1231_v15 }
  0x41   :  { %1071 = vmatprep.subr.bf16.mxu0 %v1232_v16 }
  0x44   :  { %1072 = vmatpush3.bf16.msra.mxu0 %v1233_v17 }
  0xa6   :  { %v75_v20 = vpop.permute.xlu0 %74 }
  0xa7   :  { %v83_v21 = vmul.f32 %v993_v18, %v75_v20 }
  0xa9   :  { %v1442_v22 = vadd.f32 %v994_v19, %v83_v21 }
  0xab   :  { %v95_v23 = vand.u32 2139095040, %v1442_v22  ;;  %v92_v27 = vand.u32 2147483647, %v1442_v22  ;;  %vm94_vm7 = vcmp.lt.s32.totalorder %v1442_v22, 0  ;;  %vm184_vm15 = vweird.f32 %v1442_v22 }
  0xad   :  { %v96_v24 = vshrl.u32 %v95_v23, 23  ;;  %v99_v31 = vand.u32 8388607, %v92_v27  ;;  %vm93_vm8 = vcmp.le.f32.partialorder %v92_v27, 0.7853982 }
  0xaf   :  { %v995_v25 = vadd.s32 4294967169, %v96_v24  ;;  %v100_v49 = vor.u32 8388608, %v99_v31 }
  0xb1   :  { %v102_v26 = vadd.s32 1, %v995_v25  ;;  %v140_v63 = vshll.u32 %v100_v49, 8 }
  0xb3   :  { %vm103_vm0 = vcmp.gt.s32.totalorder %v102_v26, 0 }
  0xb4   :  { %v104_v28 = vsel %vm103_vm0, %v102_v26, 0  ;;  %vm1338_vm0 = vmmov 0  }
  0xb5   :  { %v106_v29 = vand.u32 31, %v104_v28  ;;  %v105_v32 = vshrl.u32 %v104_v28, 5 }
  0xb7   :  { %v107_v30 = vsub.s32 32, %v106_v29  ;;  %v109_v34 = vshll.u32 %v1331_v33, %v106_v29  ;;  %v112_v36 = vshll.u32 %v1332_v35, %v106_v29  ;;  %v115_v40 = vshll.u32 %v1333_v38, %v106_v29 }
  0xb8   :  { %v118_v43 = vshll.u32 %v1334_v41, %v106_v29  ;;  %v121_v46 = vshll.u32 %v1335_v44, %v106_v29  ;;  %vm124_vm1 = vcmp.lt.s32.totalorder %v105_v32, 1  ;;  %vm127_vm2 = vcmp.lt.s32.totalorder %v105_v32, 4 }
  0xb9   :  { %v110_v37 = vshrl.u32 %v1332_v35, %v107_v30  ;;  %v113_v39 = vshrl.u32 %v1333_v38, %v107_v30  ;;  %v116_v42 = vshrl.u32 %v1334_v41, %v107_v30  ;;  %v119_v45 = vshrl.u32 %v1335_v44, %v107_v30 }
  0xba   :  { %v122_v48 = vshrl.u32 %v1336_v47, %v107_v30  ;;  %v108_v58 = vshrl.u32 %v1331_v33, %v107_v30  ;;  %vm126_vm3 = vcmp.lt.s32.totalorder %v105_v32, 3  ;;  %vm125_vm4 = vcmp.lt.s32.totalorder %v105_v32, 2 }
  0xbb   :  { %v111_v50 = vor.u32 %v110_v37, %v109_v34  ;;  %v114_v51 = vor.u32 %v113_v39, %v112_v36  ;;  %v117_v52 = vor.u32 %v116_v42, %v115_v40  ;;  %v120_v53 = vor.u32 %v119_v45, %v118_v43 }
  0xbc   :  { %v123_v54 = vor.u32 %v122_v48, %v121_v46 }
  0xbd   :  { %v129_v55 = vsel %vm127_vm2, %v117_v52, 2102212464  ;;  %v132_v56 = vsel %vm124_vm1, %v111_v50, %v114_v51  ;;  %v136_v57 = vsel %vm124_vm1, %v114_v51, %v117_v52  ;;  %v133_v59 = vsel %vm127_vm2, %v120_v53, 920167782 }
  0xbe   :  { %v137_v60 = vsel %vm127_vm2, %v123_v54, 1326507024  ;;  %v134_v61 = vsel %vm126_vm3, %v117_v52, %v133_v59  ;;  %v128_v0 = vsel %vm124_vm1, %v108_v58, %v111_v50  ;;  %v130_v2 = vsel %vm126_vm3, %v114_v51, %v129_v55  ;;  %v1234_v59 = vld [vmem:[%s1580_s6] sm:$0xff]  }
  0xbf   :  { %v138_v62 = vsel %vm126_vm3, %v120_v53, %v137_v60  ;;  %v135_v3 = vsel %vm125_vm4, %v132_v56, %v134_v61  ;;  %v131_v9 = vsel %vm125_vm4, %v128_v0, %v130_v2  ;;  %v1337_v60 = vmov 0.0   ;;  %v1236_v61 = vld [vmem:[%s1580_s6 + $0x10] sm:$0xff]   ;;  %v1239_v0 = vld [vmem:[%s1580_s6 + $0x28] sm:$0xff]  }
  0xc0   :  { %v139_v4 = vsel %vm125_vm4, %v136_v57, %v138_v62  ;;  %v1451_v7 = vmul.u32.u64.low %v140_v63, %v135_v3  ;;  %v1452_v8 = vmul.u32.u64.high %v140_v63, %v135_v3, %v1451_v7  ;;  %v147_v11 = vmul.u32 %v140_v63, %v131_v9  ;;  %1115 = vmatprep.subr.bf16.mxu1 %v1337_v60  ;;  %1135 = vmatprep.subr.bf16.mxu0 %v1337_v60  ;;  %v1237_v62 = vld [vmem:[%s1580_s6 + $0x18] sm:$0xff]   ;;  %v1240_v2 = vld [vmem:[%s1580_s6 + $0x30] sm:$0xff]  }
  0xc1   :  { %v1448_v5 = vmul.u32.u64.low %v140_v63, %v139_v4  ;;  %v1449_v6 = vmul.u32.u64.high %v140_v63, %v139_v4, %v1448_v5  ;;  %1116 = vmatpush3.bf16.msra.mxu1 %v1234_v59  ;;  %1131 = vmatprep.mubr.msk.bf16.mxu1 %vm1338_vm0, %v1337_v60  ;;  %v1238_v63 = vld [vmem:[%s1580_s6 + $0x20] sm:$0xff]   ;;  %v1241_v3 = vld [vmem:[%s1580_s6 + $0x38] sm:$0xff]   ;;  %v1339_v4 = vmov 0   ;;  %vm985_vm1 = vcmask 15360  }
  0xc2   :  { %v150_v10 = vadd.s32 1, %v1452_v8  ;;  %1117 = vmatprep.subr.bf16.mxu1 %v1337_v60  ;;  %1215 = vset.pattern.permute.xlu0 %v1339_v4  ;;  %v1340_v5 = vmov 1   ;;  %v1256_v4 = vld [vmem:[#allocation4 + $0x70] sm:$0xff]  }
  0xc3   :  { %vm149_vm5 = vc.u32 %v1449_v6, %v1451_v7  ;;  %v148_v24 = vadd.s32 %v1451_v7, %v1449_v6  ;;  %1216 = vset.pattern.permute.xlu1 %v1340_v5  ;;  %594 = vperm.xlu0 %1215, %v1433_v1   ;;  %v1242_v6 = vld [vmem:[#allocation4] sm:$0xff]  }
  0xc4   :  { %v151_v12 = vsel %vm149_vm5, %v150_v10, %v1452_v8  ;;  %610 = vperm.xlu1 %1216, %v1433_v1   ;;  %v1003_v8 = vld [vmem:[%s1579_s5] ss:$0 sm:$0xff] }
  0xc5   :  { %v152_v13 = vadd.s32 %v151_v12, %v147_v11 }
  0xc7   :  { %v153_v14 = vadd.s32 536870912, %v152_v13  ;;  %1217 = vset.pattern.permute.xlu0 %v1340_v5  ;;  %v1257_v5 = vld [vmem:[#allocation4 + $0x78] sm:$0xff]  }
  0xc9   :  { %v154_v15 = vshrl.u32 %v153_v14, 30 }
  0xcb   :  { %v155_v16 = vshll.u32 %v154_v15, 30  ;;  %v178_v37 = vsub.s32 4, %v154_v15 }
  0xcd   :  { %v156_v17 = vsub.s32 %v152_v13, %v155_v16  ;;  %v179_v40 = vsel %vm94_vm7, %v178_v37, %v154_v15 }
  0xce   :  { %v181_v42 = vsel %vm93_vm8, 0, %v179_v40 }
  0xcf   :  { %v158_v18 = vsub.s32 0, %v156_v17  ;;  %v185_v43 = vadd.s32 3, %v181_v42  ;;  %v289_v45 = vand.u32 3, %v181_v42 }
  0xd1   :  { %v996_v19 = vmin.u32 %v158_v18, %v156_v17  ;;  %v186_v44 = vand.u32 3, %v185_v43  ;;  %vm294_vm10 = vcmp.eq.s32.totalorder %v289_v45, 2  ;;  %vm291_vm12 = vcmp.eq.s32.totalorder %v289_v45, 0  ;;  %v1028_v43 = vld [vmem:[%s1581_s7] ss:$0 sm:$0xff] }
  0xd2   :  { %vm290_vm14 = vcmp.lt.s32.totalorder %v289_v45, 2 }
  0xd3   :  { %v160_v20 = vclz %v996_v19  ;;  %vm191_vm9 = vcmp.eq.s32.totalorder %v186_v44, 2  ;;  %vm188_vm11 = vcmp.eq.s32.totalorder %v186_v44, 0  ;;  %vm187_vm13 = vcmp.lt.s32.totalorder %v186_v44, 2 }
  0xd5   :  { %v997_v21 = vadd.s32 4294967294, %v160_v20 }
  0xd7   :  { %vm998_vm6 = vcmp.lt.s32.totalorder %v997_v21, 0 }
  0xd8   :  { %v163_v23 = vsel %vm998_vm6, 0, %v997_v21 }
  0xd9   :  { %v164_v25 = vsub.s32 32, %v163_v23  ;;  %v168_v26 = vsub.s32 4294967266, %v163_v23  ;;  %v165_v28 = vshll.u32 %v156_v17, %v163_v23 }
  0xdb   :  { %v166_v29 = vshrl.u32 %v148_v24, %v164_v25  ;;  %v169_v30 = vadd.s32 127, %v168_v26  ;;  %v1243_v24 = vld [vmem:[#allocation4 + $0x8] sm:$0xff]   ;;  %v1244_v25 = vld [vmem:[#allocation4 + $0x10] sm:$0xff]   ;;  %v1245_v26 = vld [vmem:[#allocation4 + $0x18] sm:$0xff]  }
  0xdd   :  { %v167_v31 = vor.u32 %v166_v29, %v165_v28  ;;  %v170_v32 = vshll.u32 %v169_v30, 23  ;;  %v1246_v28 = vld [vmem:[#allocation4 + $0x20] sm:$0xff]   ;;  %v1247_v29 = vld [vmem:[#allocation4 + $0x28] sm:$0xff]   ;;  %v1248_v30 = vld [vmem:[#allocation4 + $0x30] sm:$0xff]  }
  0xdf   :  { %v171_v33 = vor.u32 4788187, %v170_v32  ;;  %v174_v35 = vcvt.s32.f32 %v167_v31  ;;  %v1249_v31 = vld [vmem:[#allocation4 + $0x38] sm:$0xff]   ;;  %v1250_v32 = vld [vmem:[#allocation4 + $0x40] sm:$0xff]  }
  0xe1   :  { %v172_v34 = vand.u32 2147483647, %v171_v33  ;;  %v597_v33 = vlaneseq }
  0xe3   :  { %v175_v36 = vmul.f32 %v174_v35, %v172_v34  ;;  %v598_v34 = vshrl.u32 %v597_v33, 7  ;;  %v590_v35 = vld [vmem:[%s1577_s3] sm:$0x1] }
  0xe5   :  { %v176_v38 = vxor.u32 2147483648, %v175_v36  ;;  %v599_v37 = vsub.s32 0, %v598_v34 }
  0xe7   :  { %v177_v39 = vsel %vm94_vm7, %v176_v38, %v175_v36  ;;  %v591_v36 = vunpack.c.l.bf16 %v590_v35 }
  0xe8   :  { %v180_v41 = vsel %vm93_vm8, %v1442_v22, %v177_v39  ;;  %v1235_v22 = vld [vmem:[%s1580_s6 + $0x8] sm:$0xff]   ;;  %v615_v39 = vsub.s32 1, %v598_v34 }
  0xe9   :  { %1266 = vcosq.f32 %v180_v41  ;;  %1118 = vmatpush3.bf16.msra.mxu1 %v1235_v22  ;;  %v600_v38 = vrot.slane %v591_v36, %v599_v37 }
  0xea   :  { %1268 = vsinq.f32 %v180_v41  ;;  %1119 = vmatprep.subr.bf16.mxu1 %v1337_v60  ;;  %v616_v42 = vrot.slane %v591_v36, %v615_v39 }
  0xed   :  { %1120 = vmatpush3.bf16.msra.mxu1 %v1236_v61 }
  0xee   :  { %1121 = vmatprep.subr.bf16.mxu1 %v1337_v60 }
  0xf1   :  { %1122 = vmatpush3.bf16.msra.mxu1 %v1237_v62  ;;  %v1251_v62 = vld [vmem:[#allocation4 + $0x48] sm:$0xff]  }
  0xf2   :  { %1123 = vmatprep.subr.bf16.mxu1 %v1337_v60 }
  0xf3   :  { %v1267_v46 = vpop.eup %1266 }
  0xf4   :  { %v1269_v47 = vpop.eup %1268  ;;  %v192_v48 = vxor.u32 2147483648, %v1267_v46 }
  0xf5   :  { %v189_v49 = vxor.u32 2147483648, %v1269_v47  ;;  %1124 = vmatpush3.bf16.msra.mxu1 %v1238_v63  ;;  %v1252_v63 = vld [vmem:[#allocation4 + $0x50] sm:$0xff]  }
  0xf6   :  { %v193_v50 = vsel %vm191_vm9, %v192_v48, %v1269_v47  ;;  %v296_v27 = vsel %vm294_vm10, %v192_v48, %v1269_v47  ;;  %1125 = vmatprep.subr.bf16.mxu1 %v1337_v60 }
  0xf7   :  { %v190_v51 = vsel %vm188_vm11, %v1267_v46, %v189_v49  ;;  %v293_v52 = vsel %vm291_vm12, %v1267_v46, %v189_v49 }
  0xf8   :  { %v194_v53 = vsel %vm187_vm13, %v190_v51, %v193_v50  ;;  %v297_v54 = vsel %vm290_vm14, %v293_v52, %v296_v27 }
  0xf9   :  { %v195_v55 = vsel %vm184_vm15, nan, %v194_v53  ;;  %v298_v56 = vsel %vm184_vm15, nan, %v297_v54  ;;  %1126 = vmatpush3.bf16.msra.mxu1 %v1239_v0  ;;  %v1253_v0 = vld [vmem:[#allocation4 + $0x58] sm:$0xff]  }
  0xfa   :  { %v299_v57 = vpack.c.bf16 %v195_v55, %v195_v55  ;;  %v300_v58 = vpack.c.bf16 %v298_v56, %v298_v56  ;;  %1127 = vmatprep.subr.bf16.mxu1 %v1337_v60 }
  0xfc   :  { %468 = vmatprep.mubr.bf16.mxu0 %v300_v58 }
  0xfd   :  { %469 = vmatmul.mubr.bf16.vlgmr.msra.gmra.mrb[0].mxu0 %v299_v57  ;;  %1128 = vmatpush3.bf16.msra.mxu1 %v1240_v2  ;;  %v1254_v2 = vld [vmem:[#allocation4 + $0x60] sm:$0xff]  }
  0xfe   :  { %1151 = vmatprep.mubr.msk.bf16.mxu0 %vm1338_vm0, %v1337_v60  ;;  %1129 = vmatprep.subr.bf16.mxu1 %v1337_v60 }
  0xff   :  { %1136 = vmatpush3.bf16.msra.mxu0 %v1242_v6  ;;  %v1258_v6 = vld [vmem:[%s1584_s10] sm:$0xff]  }
 0x100   :  { %1137 = vmatprep.subr.bf16.mxu0 %v1337_v60 }
 0x101   :  { %1130 = vmatpush3.bf16.msra.mxu1 %v1241_v3  ;;  %v1255_v3 = vld [vmem:[#allocation4 + $0x68] sm:$0xff]  }
 0x102   :  { %1155 = vmatprep.subr.bf16.mxu1 %v1337_v60 }
 0x103   :  { %1138 = vmatpush3.bf16.msra.mxu0 %v1243_v24  ;;  %v1260_v24 = vld [vmem:[%s1584_s10 + $0x10] sm:$0xff]  }
 0x104   :  { %1139 = vmatprep.subr.bf16.mxu0 %v1337_v60 }
 0x107   :  { %1140 = vmatpush3.bf16.msra.mxu0 %v1244_v25  ;;  %v1261_v25 = vld [vmem:[%s1584_s10 + $0x18] sm:$0xff]  }
 0x108   :  { %1141 = vmatprep.subr.bf16.mxu0 %v1337_v60 }
 0x10b   :  { %1142 = vmatpush3.bf16.msra.mxu0 %v1245_v26  ;;  %v1262_v26 = vld [vmem:[%s1584_s10 + $0x20] sm:$0xff]  }
 0x10c   :  { %1143 = vmatprep.subr.bf16.mxu0 %v1337_v60 }
 0x10f   :  { %1144 = vmatpush3.bf16.msra.mxu0 %v1246_v28  ;;  %v1263_v28 = vld [vmem:[%s1584_s10 + $0x28] sm:$0xff]  }
 0x110   :  { %1145 = vmatprep.subr.bf16.mxu0 %v1337_v60 }
 0x113   :  { %1146 = vmatpush3.bf16.msra.mxu0 %v1247_v29  ;;  %v1264_v29 = vld [vmem:[%s1584_s10 + $0x30] sm:$0xff]  }
 0x114   :  { %1147 = vmatprep.subr.bf16.mxu0 %v1337_v60 }
 0x117   :  { %1148 = vmatpush3.bf16.msra.mxu0 %v1248_v30  ;;  %v1265_v30 = vld [vmem:[%s1584_s10 + $0x38] sm:$0xff]  }
 0x118   :  { %1149 = vmatprep.subr.bf16.mxu0 %v1337_v60 }
 0x11b   :  { %1150 = vmatpush3.bf16.msra.mxu0 %v1249_v31  ;;  %v1039_v31 = vld [vmem:[%s1583_s9 + $0x1] ss:$0 sm:$0xff] }
 0x11c   :  { %1175 = vmatprep.subr.bf16.mxu0 %v1337_v60 }
 0x142   :  { %v595_v40 = vpop.permute.xlu0 %594 }
 0x143   :  { %v601_v41 = vmul.f32 %v600_v38, %v595_v40  ;;  %v611_v44 = vpop.permute.xlu1 %610 }
 0x144   :  { %v617_v46 = vmul.f32 %v616_v42, %v611_v44 }
 0x145   :  { %v608_v45 = vadd.f32 %v1028_v43, %v601_v41 }
 0x147   :  { %v618_v47 = vadd.f32 %v617_v46, %v608_v45  ;;  %v1048_v46 = vld [vmem:[%s1585_s11] ss:$0 sm:$0xff] }
 0x1d0   :  { %v1073_v7 = vpop.f32.mrb[0].mxu0 }
 0x1d1   :  { %v1074_v9 = vpop.f32.mrb[1].mxu0 }
 0x1d2   :  { %v1075_v10 = vadd.f32 %v1074_v9, %v1073_v7  ;;  %v1076_v11 = vpop.f32.mrb[2].mxu0  ;;  %v1029_v7 = vld [vmem:[%s1583_s9] ss:$0 sm:$0xff] }
 0x1d3   :  { %v1077_v12 = vpop.f32.mrb[3].mxu0 }
 0x1d4   :  { %v471_v13 = vadd.f32 %v1075_v10, %v1003_v8 }
 0x1d6   :  { %v477_v14 = vmul.f32 %v471_v13, %v471_v13  ;;  %v476_v19 = vmul.f32 0.5, %v471_v13 }
 0x1d8   :  { %v478_v15 = vmul.f32 %v477_v14, %v471_v13 }
 0x1da   :  { %v479_v16 = vmul.f32 0.044715, %v478_v15 }
 0x1dc   :  { %v480_v17 = vadd.f32 %v479_v16, %v471_v13 }
 0x1de   :  { %v481_v1 = vmul.f32 0.7978846, %v480_v17 }
 0x1e0   :  { %1270 = vtanh.f32 %v481_v1 }
 0x1ea   :  { %v1271_v18 = vpop.eup %1270 }
 0x1eb   :  { %v483_v20 = vadd.f32 1.0, %v1271_v18 }
 0x1ed   :  { %v484_v21 = vmul.f32 %v483_v20, %v476_v19 }
 0x1ef   :  { %v485_v23 = vpack.c.bf16 %v484_v21, %v484_v21 }
 0x1f1   :  { %1132 = vmatmul.mubr.bf16.vlgmr.msra.gmra.mrb[0].mxu1 %v485_v23  ;;  %v1259_v23 = vld [vmem:[%s1584_s10 + $0x8] sm:$0xff]  }
 0x1f2   :  { %1171 = vmatprep.mubr.msk.bf16.mxu1 %vm1338_vm0, %v1337_v60  ;;  %1156 = vmatpush3.bf16.msra.mxu1 %v1250_v32 }
 0x1f3   :  { %1157 = vmatprep.subr.bf16.mxu1 %v1337_v60 }
 0x1f6   :  { %1158 = vmatpush3.bf16.msra.mxu1 %v1251_v62 }
 0x1f7   :  { %1159 = vmatprep.subr.bf16.mxu1 %v1337_v60 }
 0x1fa   :  { %1160 = vmatpush3.bf16.msra.mxu1 %v1252_v63 }
 0x1fb   :  { %1161 = vmatprep.subr.bf16.mxu1 %v1337_v60 }
 0x1fe   :  { %1162 = vmatpush3.bf16.msra.mxu1 %v1253_v0 }
 0x1ff   :  { %1163 = vmatprep.subr.bf16.mxu1 %v1337_v60 }
 0x202   :  { %1164 = vmatpush3.bf16.msra.mxu1 %v1254_v2 }
 0x203   :  { %1165 = vmatprep.subr.bf16.mxu1 %v1337_v60 }
 0x206   :  { %1166 = vmatpush3.bf16.msra.mxu1 %v1255_v3 }
 0x207   :  { %1167 = vmatprep.subr.bf16.mxu1 %v1337_v60 }
 0x20a   :  { %1168 = vmatpush3.bf16.msra.mxu1 %v1256_v4 }
 0x20b   :  { %1169 = vmatprep.subr.bf16.mxu1 %v1337_v60 }
 0x20e   :  { %1170 = vmatpush3.bf16.msra.mxu1 %v1257_v5 }
 0x2c4   :  { %v584_v48 = vpop.f32.mrb[0].mxu1 }
 0x2c5   :  { %v619_v49 = vadd.f32 %v618_v47, %v584_v48  ;;  %v1133_v50 = vpop.f32.mrb[1].mxu1 }
 0x2c6   :  { %v587_v27 = vpop.f32.mrb[2].mxu1 }
 0x2c7   :  { %v621_v51 = vmul.f32 %v619_v49, %v619_v49  ;;  %v1134_v52 = vpop.f32.mrb[3].mxu1  ;;  %v620_v58 = vmul.f32 0.5, %v619_v49 }
 0x2c9   :  { %v622_v53 = vmul.f32 %v621_v51, %v619_v49 }
 0x2cb   :  { %v623_v54 = vmul.f32 0.044715, %v622_v53 }
 0x2cd   :  { %v624_v55 = vadd.f32 %v623_v54, %v619_v49 }
 0x2cf   :  { %v625_v56 = vmul.f32 0.7978846, %v624_v55 }
 0x2d1   :  { %1272 = vtanh.f32 %v625_v56 }
 0x2db   :  { %v1273_v57 = vpop.eup %1272 }
 0x2dc   :  { %v627_v59 = vadd.f32 1.0, %v1273_v57 }
 0x2de   :  { %v628_v22 = vmul.f32 %v627_v59, %v620_v58 }
 0x2e0   :  { %v629_v61 = vpack.c.bf16 %v628_v22, %v628_v22 }
 0x2e2   :  { %1152 = vmatmul.mubr.bf16.vlgmr.msra.gmra.mrb[4].mxu0 %v629_v61 }
 0x2e3   :  { %1191 = vmatprep.mubr.msk.bf16.mxu0 %vm1338_vm0, %v1337_v60  ;;  %1176 = vmatpush3.bf16.msra.mxu0 %v1258_v6 }
 0x2e4   :  { %1177 = vmatprep.subr.bf16.mxu0 %v1337_v60 }
 0x2e7   :  { %1178 = vmatpush3.bf16.msra.mxu0 %v1259_v23 }
 0x2e8   :  { %1179 = vmatprep.subr.bf16.mxu0 %v1337_v60 }
 0x2eb   :  { %1180 = vmatpush3.bf16.msra.mxu0 %v1260_v24 }
 0x2ec   :  { %1181 = vmatprep.subr.bf16.mxu0 %v1337_v60 }
 0x2ef   :  { %1182 = vmatpush3.bf16.msra.mxu0 %v1261_v25 }
 0x2f0   :  { %1183 = vmatprep.subr.bf16.mxu0 %v1337_v60 }
 0x2f3   :  { %1184 = vmatpush3.bf16.msra.mxu0 %v1262_v26 }
 0x2f4   :  { %1185 = vmatprep.subr.bf16.mxu0 %v1337_v60 }
 0x2f7   :  { %1186 = vmatpush3.bf16.msra.mxu0 %v1263_v28 }
 0x2f8   :  { %1187 = vmatprep.subr.bf16.mxu0 %v1337_v60 }
 0x2fb   :  { %1188 = vmatpush3.bf16.msra.mxu0 %v1264_v29 }
 0x2fc   :  { %1189 = vmatprep.subr.bf16.mxu0 %v1337_v60 }
 0x2ff   :  { %1190 = vmatpush3.bf16.msra.mxu0 %v1265_v30 }
 0x3b5   :  { %v735_v8 = vpop.f32.mrb[4].mxu0 }
 0x3b6   :  { %v736_v9 = vadd.f32 %v1029_v7, %v735_v8  ;;  %v1153_v10 = vpop.f32.mrb[5].mxu0 }
 0x3b7   :  { %v738_v11 = vpop.f32.mrb[6].mxu0 }
 0x3b8   :  { %v742_v12 = vmul.f32 %v736_v9, %v736_v9  ;;  %v1154_v13 = vpop.f32.mrb[7].mxu0  ;;  %v741_v18 = vmul.f32 0.5, %v736_v9 }
 0x3ba   :  { %v743_v14 = vmul.f32 %v742_v12, %v736_v9 }
 0x3bc   :  { %v744_v15 = vmul.f32 0.044715, %v743_v14 }
 0x3be   :  { %v745_v16 = vadd.f32 %v744_v15, %v736_v9 }
 0x3c0   :  { %v746_v17 = vmul.f32 0.7978846, %v745_v16 }
 0x3c2   :  { %1274 = vtanh.f32 %v746_v17 }
 0x3cc   :  { %v1275_v1 = vpop.eup %1274 }
 0x3cd   :  { %v748_v19 = vadd.f32 1.0, %v1275_v1 }
 0x3cf   :  { %v749_v20 = vmul.f32 %v748_v19, %v741_v18 }
 0x3d1   :  { %v750_v21 = vpack.c.bf16 %v749_v20, %v749_v20 }
 0x3d3   :  { %1172 = vmatmul.mubr.bf16.vlgmr.msra.gmra.mrb[4].mxu1 %v750_v21 }
 0x4a6   :  { %v858_v32 = vpop.f32.mrb[4].mxu1 }
 0x4a7   :  { %v859_v33 = vadd.f32 %v1039_v31, %v858_v32  ;;  %v1173_v34 = vpop.f32.mrb[5].mxu1 }
 0x4a8   :  { %v861_v35 = vpop.f32.mrb[6].mxu1 }
 0x4a9   :  { %v865_v36 = vmul.f32 %v859_v33, %v859_v33  ;;  %v1174_v37 = vpop.f32.mrb[7].mxu1  ;;  %v864_v43 = vmul.f32 0.5, %v859_v33 }
 0x4ab   :  { %v866_v38 = vmul.f32 %v865_v36, %v859_v33 }
 0x4ad   :  { %v867_v39 = vmul.f32 0.044715, %v866_v38 }
 0x4af   :  { %v868_v40 = vadd.f32 %v867_v39, %v859_v33 }
 0x4b1   :  { %v869_v41 = vmul.f32 0.7978846, %v868_v40 }
 0x4b3   :  { %1276 = vtanh.f32 %v869_v41 }
 0x4bd   :  { %v1277_v42 = vpop.eup %1276 }
 0x4be   :  { %v871_v44 = vadd.f32 1.0, %v1277_v42 }
 0x4c0   :  { %v872_v60 = vmul.f32 %v871_v44, %v864_v43 }
 0x4c2   :  { %v873_v45 = vpack.c.bf16 %v872_v60, %v872_v60 }
 0x4c4   :  { %1192 = vmatmul.mubr.bf16.vlgmr.msra.gmra.mrb[8].mxu0 %v873_v45 }
 0x597   :  { %v979_v47 = vpop.f32.mrb[8].mxu0 }
 0x598   :  { %v980_v48 = vadd.f32 %v1048_v46, %v979_v47  ;;  %v1193_v49 = vpop.f32.mrb[9].mxu0 }
 0x599   :  { %v982_v50 = vpop.f32.mrb[10].mxu0 }
 0x59a   :  { %986 = vst.msk [vmem:[%s1586_s12] sm:$0xff] %vm985_vm1, %v980_v48  ;;  %v1194_v27 = vpop.f32.mrb[11].mxu0 }
 0x59b   :  { %991 = vsyncpa [#allocation3], 1 }
 0x59c   :  { %992 = vsyncpa [#allocation5], 1 }

</bundles_post_ra>
